<compile_context>
chip_gen: v5e
topology: v5e:2x2
jax: 0.10.0
libtpu: 0.0.40
codegen_flags: <defaults>
</compile_context>

<pallas_src>
import functools

import jax
import jax.numpy as jnp
from jax.experimental import pallas as pl
from jax.experimental.pallas import tpu as pltpu


def _locked_dropout_kernel(u_ref, x_ref, out_ref, *, keep_prob, inv_keep, batch):
    # u_ref   : (bt, H)    f32 uniforms in [0, 1), shared across the batch dim ("locked")
    # x_ref   : (bt, B*H)  input block, lane/sublane dense
    # out_ref : (bt, B*H)  output block
    u = u_ref[...]
    mask = jnp.where(u < jnp.float32(keep_prob),
                     jnp.float32(inv_keep),
                     jnp.float32(0.0))                       # (bt, H), values in {0, 1/keep}
    # Replicate along the lane axis so mask[t, b*H + h] == mask[t, h]; with
    # H % 128 == 0 this is pure vreg copies (no cross-sublane relayout).
    m = jnp.tile(mask, (1, batch))                           # (bt, B*H)
    x = x_ref[...]
    # Multiply in f32, single cast at the store (no-op for f32 inputs).
    out_ref[...] = (x.astype(jnp.float32) * m).astype(out_ref.dtype)


def _choose_block_t(T, B, H, itemsize, budget_bytes=4 << 20):
    """Pick a time-axis tile from a per-step VMEM budget (multiple of 8)."""
    # Bytes resident per time-row per pipeline stage: x in + x out + uniforms.
    row_bytes = 2 * B * H * itemsize + H * 4
    bt = max(8, min(T, budget_bytes // (2 * max(row_bytes, 1))))
    if bt < T:
        bt = max(8, (bt // 8) * 8)
    else:
        bt = T
    # v7x megacore: if everything fits in one step but there is real work, split
    # the grid so the "parallel" axis can shard across the 2 TensorCores.
    if bt == T and T >= 16 and T * row_bytes > (1 << 20):
        half = max(8, ((T // 2 + 7) // 8) * 8)
        if half < T:
            bt = half
    return bt, row_bytes


def locked_dropout(x, dropout, *, seed, training=True, block_t=None, donate_x=False):
    """LockedDropout forward.

    x: (T, B, H) array. dropout: python float in [0, 1). seed: python int.
    training=False -> identity (module's eval path).
    donate_x=True aliases x's buffer to the output (only if the caller no longer
    needs x); does not change HBM traffic, just footprint.
    """
    if (not training) or dropout == 0.0:
        return x
    assert 0.0 < dropout < 1.0, "dropout must be in [0, 1)"

    T, B, H = x.shape
    keep_prob = 1.0 - dropout
    inv_keep = 1.0 / keep_prob
    itemsize = jnp.dtype(x.dtype).itemsize

    if block_t is None:
        block_t, row_bytes = _choose_block_t(T, B, H, itemsize)
    else:
        row_bytes = 2 * B * H * itemsize + H * 4
    grid_t = pl.cdiv(T, block_t)

    # One uniform per (t, h); the mask is shared ("locked") across the batch dim
    # and is a pure function of seed -- independent of tiling / hardware.
    u = jax.random.uniform(jax.random.PRNGKey(seed), (T, H), dtype=jnp.float32)

    # Free contiguous collapse: (T, B, H) -> (T, B*H) so blocks are lane-dense.
    x2d = x.reshape(T, B * H)

    kernel = functools.partial(
        _locked_dropout_kernel,
        keep_prob=keep_prob, inv_keep=inv_keep, batch=B,
    )

    # Explicit VMEM limit with headroom over the double-buffered working set;
    # keeps us safely under v5e/v6e scoped defaults and v7x's 64 MiB physical VMEM.
    needed = 2 * block_t * row_bytes + block_t * B * H * 4  # + f32 temporaries
    vmem_limit = int(min(max(needed * 3 // 2, 8 << 20), 48 << 20))

    out2d = pl.pallas_call(
        kernel,
        out_shape=jax.ShapeDtypeStruct((T, B * H), x.dtype),
        grid=(grid_t,),
        in_specs=[
            pl.BlockSpec((block_t, H), lambda i: (i, 0)),        # uniforms
            pl.BlockSpec((block_t, B * H), lambda i: (i, 0)),    # x
        ],
        out_specs=pl.BlockSpec((block_t, B * H), lambda i: (i, 0)),
        compiler_params=pltpu.CompilerParams(
            dimension_semantics=("parallel",),
            vmem_limit_bytes=vmem_limit,
        ),
        input_output_aliases=({1: 0} if donate_x else {}),
    )(u, x2d)

    return out2d.reshape(T, B, H)


if __name__ == "__main__":
    # Small shapes consistent with the module: (seq, batch, hidden).
    T, B, H = 8, 2, 128
    dropout = 0.25
    keep = 1.0 - dropout

    key = jax.random.PRNGKey(0)
    # Keep x away from zero so the applied mask can be recovered unambiguously.
    x = jax.random.uniform(key, (T, B, H), dtype=jnp.float32, minval=0.5, maxval=1.5)

    # Training mode: kernel applies the locked dropout mask.
    y = locked_dropout(x, dropout, seed=1234, training=True)
    y = jax.block_until_ready(y)
    assert y.shape == x.shape and y.dtype == x.dtype

    # Eval mode: identity, exactly like the PyTorch module.
    y_eval = locked_dropout(x, dropout, seed=1234, training=False)
    assert jnp.array_equal(y_eval, x)

    # Recover the effective mask: each element of ratio must be ~0 (dropped)
    # or ~1 (kept and rescaled by 1/keep).
    ratio = y * keep / x
    is_zero = jnp.abs(ratio) < 1e-4
    is_one = jnp.abs(ratio - 1.0) < 1e-4
    assert bool(jnp.all(is_zero | is_one)), "output not of the form mask * x / keep"

    # "Locked" property: the mask is identical across the batch dimension (dim 1).
    assert bool(jnp.all(is_one == is_one[:, :1, :])), "mask not shared across batch dim"

    # Determinism: same seed -> same mask.
    y2 = locked_dropout(x, dropout, seed=1234, training=True)
    assert jnp.array_equal(y, y2)

    # Keep-rate sanity check (1024 independent draws; generous tolerance).
    keep_rate = float(jnp.mean(is_one[:, 0, :].astype(jnp.float32)))
    assert abs(keep_rate - keep) < 0.12, f"keep rate {keep_rate} far from {keep}"

    print("KERNEL_OK")
</pallas_src>

<mosaic_0001>
module attributes {stable_mosaic.version = 11 : i64} {
  func.func @_locked_dropout_kernel(%arg0: i32, %arg1: memref<8x128xf32, #tpu.memory_space<vmem>>, %arg2: memref<8x256xf32, #tpu.memory_space<vmem>>, %arg3: memref<8x256xf32, #tpu.memory_space<vmem>>) attributes {dimension_semantics = [#tpu.dimension_semantics<parallel>], iteration_bounds = array<i64: 1>, scalar_prefetch = 0 : i64, scratch_operands = 0 : i64, tpu.core_type = #tpu.core_type<tc>, window_params = [{transform_indices = @transform_0, window_bounds = array<i64: 8, 128>}, {transform_indices = @transform_1, window_bounds = array<i64: 8, 256>}, {transform_indices = @transform_2, window_bounds = array<i64: 8, 256>}]} {
    %c0 = arith.constant 0 : index
    %c0_0 = arith.constant 0 : index
    %0 = vector.load %arg1[%c0, %c0_0] : memref<8x128xf32, #tpu.memory_space<vmem>>, vector<8x128xf32>
    %cst = arith.constant 7.500000e-01 : f32
    %1 = vector.broadcast %cst : f32 to vector<8x128xf32>
    %2 = arith.cmpf olt, %0, %1 : vector<8x128xf32>
    %cst_1 = arith.constant 1.33333337 : f32
    %cst_2 = arith.constant 0.000000e+00 : f32
    %3 = vector.broadcast %cst_1 : f32 to vector<8x128xf32>
    %4 = vector.broadcast %cst_2 : f32 to vector<8x128xf32>
    %5 = arith.select %2, %3, %4 : vector<8x128xi1>, vector<8x128xf32>
    %6 = tpu.concatenate %5, %5 in 1 : vector<8x128xf32>, vector<8x128xf32> -> vector<8x256xf32>
    %c0_3 = arith.constant 0 : index
    %c0_4 = arith.constant 0 : index
    %7 = vector.load %arg2[%c0_3, %c0_4] : memref<8x256xf32, #tpu.memory_space<vmem>>, vector<8x256xf32>
    %8 = arith.mulf %7, %6 : vector<8x256xf32>
    %c0_5 = arith.constant 0 : index
    %c0_6 = arith.constant 0 : index
    %9 = vector.load %arg3[%c0_5, %c0_6] : memref<8x256xf32, #tpu.memory_space<vmem>>, vector<8x256xf32>
    tpu.vector_store %arg3[%c0_5, %c0_6], %8 {strides = array<i32>} : memref<8x256xf32, #tpu.memory_space<vmem>>, vector<8x256xf32>,
    return
  }
  func.func @transform_0(%arg0: i32) -> (i32, i32) {
    %c0_i32 = arith.constant 0 : i32
    %c0_i32_0 = arith.constant 0 : i32
    return %arg0, %c0_i32 : i32, i32
  }
  func.func @transform_1(%arg0: i32) -> (i32, i32) {
    %c0_i32 = arith.constant 0 : i32
    %c0_i32_0 = arith.constant 0 : i32
    return %arg0, %c0_i32 : i32, i32
  }
  func.func @transform_2(%arg0: i32) -> (i32, i32) {
    %c0_i32 = arith.constant 0 : i32
    %c0_i32_0 = arith.constant 0 : i32
    return %arg0, %c0_i32 : i32, i32
  }
}

</mosaic_0001>

<bundles_post_ra>
// kernel: tpu_custom_call.1
= control target key start
LH: loop header
LB: loop body
LE: loop exit
PB: predicated region body
PF: predicated region fallthrough
CT: control target
= control target key end

     0   :  { %7 = vsyncpa [#allocation3], 0  ;;  %s177_s0 = inlined_call_operand.hbm [shape: f32[8,128], index: 0, kind: input, shape index: {}]   ;;  %s178_s1 = inlined_call_operand.hbm [shape: f32[8,256], index: 1, kind: input, shape index: {}]   ;;  %s179_s2 = inlined_call_operand.hbm [shape: f32[8,256], index: 2, kind: output, shape index: {}]  }
   0x1   :  { %8 = vsyncpa [#allocation6], 0 }
   0x2   :  { %9 = vsyncpa [#allocation4], 0  ;;  %s15_s11 = sshll.u32 %s177_s0, 4  ;;  %s149_s12 = smov [#allocation2]   ;;  %s16_s11 = int_to_ptr.hbm [resolvable:$true] %s15_s11 }
   0x3   :  { %s17_s13 = sshll.u32 %s149_s12, 4  ;;  %s26_s16 = sshll.u32 %s178_s1, 4  ;;  %s18_s13 = int_to_ptr.vmem [resolvable:$true] %s17_s13  ;;  %s27_s16 = int_to_ptr.hbm [resolvable:$true] %s26_s16 }
   0x4   :  { %20 = dma.hbm_to_vmem [thread:$0]  %s16_s11, 128, %s18_s13, [#allocation3]  }
   0x5   :  { %s150_s17 = smov [#allocation5]  }
   0x6   :  { %s28_s18 = sshll.u32 %s150_s17, 4  ;;  %s29_s18 = int_to_ptr.vmem [resolvable:$true] %s28_s18 }
   0x7   :  { %31 = dma.hbm_to_vmem [thread:$0]  %s27_s16, 256, %s29_s18, [#allocation6]  }
   0x8   :  { %143 = dma.done.wait [#allocation3], 128  }
   0x9   :  { %144 = vsyncadd [#allocation3], 4294967168 }
   0xa   :  { %145 = dma.done.wait [#allocation6], 256  }
   0xb   :  { %146 = vsyncadd [#allocation6], 4294967040  ;;  %v40_v0 = vld [vmem:[#allocation2] sm:$0xff]  ;;  %v43_v1 = vld [vmem:[#allocation5] sm:$0xff]  ;;  %s151_s0 = smov [#allocation7]   ;;  %s56_s1 = sshll.u32 %s179_s2, 4  ;;  %s57_s1 = int_to_ptr.hbm [resolvable:$true] %s56_s1 }
   0xc   :  { %v44_v2 = vld [vmem:[#allocation5 + $0x8] sm:$0xff]  ;;  %vm41_vm0 = vcmp.lt.f32.partialorder %v40_v0, 0.75  ;;  %s54_s19 = sshll.u32 %s151_s0, 4  ;;  %v152_v3 = vmov 0.0   ;;  %s55_s19 = int_to_ptr.vmem [resolvable:$true] %s54_s19 }
   0xd   :  { %v42_v4 = vsel %vm41_vm0, 1.3333334, %v152_v3 }
   0xe   :  { %v45_v5 = vmul.f32 %v43_v1, %v42_v4  ;;  %v46_v6 = vmul.f32 %v44_v2, %v42_v4 }
  0x10   :  { %47 = vst [vmem:[#allocation7] sm:$0xff] %v45_v5 }
  0x11   :  { %48 = vst [vmem:[#allocation7 + $0x8] sm:$0xff] %v46_v6 }
  0x12   :  { %59 = dma.vmem_to_hbm [thread:$0]  %s55_s19, 256, %s57_s1, [#allocation4]  }
  0x13   :  { %147 = dma.done.wait [#allocation4], 256  }
  0x14   :  { %148 = vsyncadd [#allocation4], 4294967040 }
  0x15   :  { %64 = vsyncpa [#allocation3], 1 }
  0x16   :  { %65 = vsyncpa [#allocation6], 1 }
  0x17   :  { %66 = vsyncpa [#allocation4], 1 }

</bundles_post_ra>
